<compile_context>
chip_gen: v6e
topology: v6e:2x2x1
jax: 0.10.0
libtpu: 0.0.40
codegen_flags: <defaults>
</compile_context>

<pallas_src>
import math
import jax
import jax.numpy as jnp
from jax.experimental import pallas as pl
from jax.experimental.pallas import tpu as pltpu

# ---- model / problem sizes (small, consistent with the module) -------------
EMBED = 32            # embed_size
HEADS = 2             # heads
HEAD_DIM = EMBED // HEADS
T_SEQ = 8             # sequence length
MAP_DIM = 64          # map_dim
BATCH = 2
EN_NUM_LAYERS = 2     # en_num_layers (same EncoderLayer applied repeatedly)
LN_EPS = 1e-5


# ---------------------------------------------------------------------------
# Pallas kernel: one grid step processes one batch element through all layers.
# ---------------------------------------------------------------------------
def _layernorm(x, gamma, beta):
    mu = jnp.mean(x, axis=-1, keepdims=True)
    var = jnp.mean((x - mu) ** 2, axis=-1, keepdims=True)
    xhat = (x - mu) * jax.lax.rsqrt(var + LN_EPS)
    return xhat * gamma + beta


def encoder_kernel(x_ref, w_attn_ref, w1_ref, w2_ref, vec_ref, out_ref):
    x = x_ref[0]                     # (T, E)
    w_attn = w_attn_ref[...]         # (E, 4E)  = [Wq | Wk | Wv | Wo]
    w1 = w1_ref[...]                 # (E, MAP_DIM)
    w2 = w2_ref[...]                 # (MAP_DIM, E)
    vec = vec_ref[...]               # (8, 4E) packed vector params

    # ---- hoisted, pre-broadcast vector parameters (shared across layers) ----
    b_qkvo = jnp.broadcast_to(vec[0:1, :], (T_SEQ, 4 * EMBED))            # bq|bk|bv|bo
    bo_b   = jnp.broadcast_to(vec[0:1, 3 * EMBED:4 * EMBED], (T_SEQ, EMBED))
    b1_b   = jnp.broadcast_to(vec[1:2, :MAP_DIM], (T_SEQ, MAP_DIM))
    b2_b   = jnp.broadcast_to(vec[2:3, :EMBED], (T_SEQ, EMBED))
    g1_b   = jnp.broadcast_to(vec[3:4, :EMBED], (T_SEQ, EMBED))
    be1_b  = jnp.broadcast_to(vec[4:5, :EMBED], (T_SEQ, EMBED))
    g2_b   = jnp.broadcast_to(vec[5:6, :EMBED], (T_SEQ, EMBED))
    be2_b  = jnp.broadcast_to(vec[6:7, :EMBED], (T_SEQ, EMBED))

    scale = 1.0 / math.sqrt(HEAD_DIM)

    h = x
    for _ in range(EN_NUM_LAYERS):   # weight-shared layer applied sequentially
        # ---- fused Q/K/V/(O) projection: single MXU push ----
        qkvo = jnp.dot(h, w_attn, preferred_element_type=jnp.float32) + b_qkvo  # (T, 4E)

        # ---- per-head attention; fold heads through Wo (no concatenate) ----
        attn = jnp.zeros((T_SEQ, EMBED), jnp.float32)
        for hd in range(HEADS):
            lo = hd * HEAD_DIM
            qh = qkvo[:, lo:lo + HEAD_DIM]                              # (T, Hd)
            kh = qkvo[:, EMBED + lo:EMBED + lo + HEAD_DIM]              # (T, Hd)
            vh = qkvo[:, 2 * EMBED + lo:2 * EMBED + lo + HEAD_DIM]      # (T, Hd)
            s = jnp.dot(qh, kh.T, preferred_element_type=jnp.float32) * scale
            s = s - jnp.max(s, axis=-1, keepdims=True)
            p = jnp.exp(s)
            p = p / jnp.sum(p, axis=-1, keepdims=True)
            oh = jnp.dot(p, vh, preferred_element_type=jnp.float32)     # (T, Hd)
            # concat(o0, o1) @ Wo  ==  o0 @ Wo[:Hd] + o1 @ Wo[Hd:]
            wo_h = w_attn[lo:lo + HEAD_DIM, 3 * EMBED:4 * EMBED]        # (Hd, E)
            attn = attn + jnp.dot(oh, wo_h, preferred_element_type=jnp.float32)
        attn = attn + bo_b

        # ---- residual + LN1 ----
        x1 = _layernorm(attn + h, g1_b, be1_b)

        # ---- position-wise feed-forward + residual + LN2 ----
        f = jnp.dot(x1, w1, preferred_element_type=jnp.float32) + b1_b
        f = jnp.maximum(f, 0.0)
        f2 = jnp.dot(f, w2, preferred_element_type=jnp.float32) + b2_b
        h = _layernorm(x1 + f2, g2_b, be2_b)

    out_ref[0] = h


# ---------------------------------------------------------------------------
# Wrapper: packs parameters into lane-dense slabs and calls the kernel.
# ---------------------------------------------------------------------------
def encoder_pallas(x, params):
    B = x.shape[0]

    # Fused attention weight slab: (E, 4E) = [Wq | Wk | Wv | Wo]
    w_attn = jnp.concatenate(
        [params["wq"], params["wk"], params["wv"], params["wo"]], axis=1)

    # All vector params in one (8, 4E) slab (one f32 vreg worth of data).
    vec = jnp.zeros((8, 4 * EMBED), jnp.float32)
    vec = vec.at[0, :].set(jnp.concatenate(
        [params["bq"], params["bk"], params["bv"], params["bo"]], axis=-1)[0])
    vec = vec.at[1, :MAP_DIM].set(params["b1"][0])
    vec = vec.at[2, :EMBED].set(params["b2"][0])
    vec = vec.at[3, :EMBED].set(params["g1"][0])
    vec = vec.at[4, :EMBED].set(params["be1"][0])
    vec = vec.at[5, :EMBED].set(params["g2"][0])
    vec = vec.at[6, :EMBED].set(params["be2"][0])

    return pl.pallas_call(
        encoder_kernel,
        out_shape=jax.ShapeDtypeStruct((B, T_SEQ, EMBED), jnp.float32),
        grid=(B,),
        in_specs=[
            pl.BlockSpec((1, T_SEQ, EMBED), lambda b: (b, 0, 0)),      # x
            pl.BlockSpec((EMBED, 4 * EMBED), lambda b: (0, 0)),        # w_attn
            pl.BlockSpec((EMBED, MAP_DIM), lambda b: (0, 0)),          # w1
            pl.BlockSpec((MAP_DIM, EMBED), lambda b: (0, 0)),          # w2
            pl.BlockSpec((8, 4 * EMBED), lambda b: (0, 0)),            # vec slab
        ],
        out_specs=pl.BlockSpec((1, T_SEQ, EMBED), lambda b: (b, 0, 0)),
        compiler_params=pltpu.CompilerParams(
            dimension_semantics=("parallel",)),
    )(x, w_attn, params["w1"], params["w2"], vec)


# ---------------------------------------------------------------------------
# Pure-JAX reference (same math, batched) for correctness check
# ---------------------------------------------------------------------------
def encoder_ref(x, p):
    def ln(t, g, b):
        mu = t.mean(-1, keepdims=True)
        var = ((t - mu) ** 2).mean(-1, keepdims=True)
        return (t - mu) / jnp.sqrt(var + LN_EPS) * g + b

    def mha(t):
        B, S, E = t.shape
        q = t @ p["wq"] + p["bq"]
        k = t @ p["wk"] + p["bk"]
        v = t @ p["wv"] + p["bv"]
        qh = q.reshape(B, S, HEADS, HEAD_DIM).transpose(0, 2, 1, 3)
        kh = k.reshape(B, S, HEADS, HEAD_DIM).transpose(0, 2, 1, 3)
        vh = v.reshape(B, S, HEADS, HEAD_DIM).transpose(0, 2, 1, 3)
        s = jnp.einsum("bhqd,bhkd->bhqk", qh, kh) / math.sqrt(HEAD_DIM)
        a = jax.nn.softmax(s, axis=-1)
        o = jnp.einsum("bhqk,bhkd->bhqd", a, vh)
        o = o.transpose(0, 2, 1, 3).reshape(B, S, E)
        return o @ p["wo"] + p["bo"]

    h = x
    for _ in range(EN_NUM_LAYERS):
        a = mha(h)
        x1 = ln(a + h, p["g1"], p["be1"])
        f = jax.nn.relu(x1 @ p["w1"] + p["b1"])
        f2 = f @ p["w2"] + p["b2"]
        h = ln(x1 + f2, p["g2"], p["be2"])
    return h


# ---------------------------------------------------------------------------
def make_params(key):
    def lin(key, fan_in, fan_out):
        kw, kb = jax.random.split(key)
        bound = 1.0 / math.sqrt(fan_in)
        w = jax.random.uniform(kw, (fan_in, fan_out), jnp.float32, -bound, bound)
        b = jax.random.uniform(kb, (1, fan_out), jnp.float32, -bound, bound)
        return w, b

    keys = jax.random.split(key, 6)
    p = {}
    p["wq"], p["bq"] = lin(keys[0], EMBED, EMBED)
    p["wk"], p["bk"] = lin(keys[1], EMBED, EMBED)
    p["wv"], p["bv"] = lin(keys[2], EMBED, EMBED)
    p["wo"], p["bo"] = lin(keys[3], EMBED, EMBED)
    p["w1"], p["b1"] = lin(keys[4], EMBED, MAP_DIM)
    p["w2"], p["b2"] = lin(keys[5], MAP_DIM, EMBED)
    # LayerNorm: gamma=1, beta=0 (PyTorch default init)
    for name in ("g1", "g2"):
        p[name] = jnp.ones((1, EMBED), jnp.float32)
    for name in ("be1", "be2"):
        p[name] = jnp.zeros((1, EMBED), jnp.float32)
    return p


if __name__ == "__main__":
    key = jax.random.PRNGKey(0)
    k_x, k_p = jax.random.split(key, 2)

    x = jax.random.normal(k_x, (BATCH, T_SEQ, EMBED), jnp.float32)
    params = make_params(k_p)

    out = encoder_pallas(x, params)
    out = jax.block_until_ready(out)

    ref = encoder_ref(x, params)
    ref = jax.block_until_ready(ref)

    assert out.shape == (BATCH, T_SEQ, EMBED)
    assert jnp.allclose(out, ref, rtol=2e-4, atol=2e-4), (
        f"max abs err = {jnp.max(jnp.abs(out - ref))}")

    print("KERNEL_OK")
</pallas_src>

<mosaic_0001>
module attributes {stable_mosaic.version = 11 : i64} {
  func.func @encoder_kernel(%arg0: i32, %arg1: memref<1x8x32xf32, #tpu.memory_space<vmem>>, %arg2: memref<32x128xf32, #tpu.memory_space<vmem>>, %arg3: memref<32x64xf32, #tpu.memory_space<vmem>>, %arg4: memref<64x32xf32, #tpu.memory_space<vmem>>, %arg5: memref<8x128xf32, #tpu.memory_space<vmem>>, %arg6: memref<1x8x32xf32, #tpu.memory_space<vmem>>) attributes {dimension_semantics = [#tpu.dimension_semantics<parallel>], iteration_bounds = array<i64: 2>, scalar_prefetch = 0 : i64, scratch_operands = 0 : i64, tpu.core_type = #tpu.core_type<tc>, window_params = [{transform_indices = @transform_0, window_bounds = array<i64: 1, 8, 32>}, {pipeline_mode = #tpu.pipeline_mode<synchronous>, transform_indices = @transform_1, window_bounds = array<i64: 32, 128>}, {pipeline_mode = #tpu.pipeline_mode<synchronous>, transform_indices = @transform_2, window_bounds = array<i64: 32, 64>}, {pipeline_mode = #tpu.pipeline_mode<synchronous>, transform_indices = @transform_3, window_bounds = array<i64: 64, 32>}, {pipeline_mode = #tpu.pipeline_mode<synchronous>, transform_indices = @transform_4, window_bounds = array<i64: 8, 128>}, {transform_indices = @transform_5, window_bounds = array<i64: 1, 8, 32>}]} {
    %c0 = arith.constant 0 : index
    %c0_0 = arith.constant 0 : index
    %c0_1 = arith.constant 0 : index
    %0 = vector.load %arg1[%c0, %c0_0, %c0_1] : memref<1x8x32xf32, #tpu.memory_space<vmem>>, vector<1x8x32xf32>
    %1 = vector.shape_cast %0 : vector<1x8x32xf32> to vector<8x32xf32>
    %c0_2 = arith.constant 0 : index
    %c0_3 = arith.constant 0 : index
    %2 = vector.load %arg2[%c0_2, %c0_3] : memref<32x128xf32, #tpu.memory_space<vmem>>, vector<32x128xf32>
    %c0_4 = arith.constant 0 : index
    %c0_5 = arith.constant 0 : index
    %3 = vector.load %arg3[%c0_4, %c0_5] : memref<32x64xf32, #tpu.memory_space<vmem>>, vector<32x64xf32>
    %c0_6 = arith.constant 0 : index
    %c0_7 = arith.constant 0 : index
    %4 = vector.load %arg4[%c0_6, %c0_7] : memref<64x32xf32, #tpu.memory_space<vmem>>, vector<64x32xf32>
    %c0_8 = arith.constant 0 : index
    %c0_9 = arith.constant 0 : index
    %5 = vector.load %arg5[%c0_8, %c0_9] : memref<8x128xf32, #tpu.memory_space<vmem>>, vector<8x128xf32>
    %6 = vector.extract_strided_slice %5 {offsets = [0, 0], sizes = [1, 128], strides = [1, 1]} : vector<8x128xf32> to vector<1x128xf32>
    %7 = vector.shape_cast %6 : vector<1x128xf32> to vector<1x128xf32>
    %8 = vector.broadcast %7 : vector<1x128xf32> to vector<8x128xf32>
    %9 = vector.extract_strided_slice %5 {offsets = [0, 96], sizes = [1, 32], strides = [1, 1]} : vector<8x128xf32> to vector<1x32xf32>
    %10 = vector.shape_cast %9 : vector<1x32xf32> to vector<1x32xf32>
    %11 = vector.broadcast %10 : vector<1x32xf32> to vector<8x32xf32>
    %12 = vector.extract_strided_slice %5 {offsets = [1, 0], sizes = [1, 64], strides = [1, 1]} : vector<8x128xf32> to vector<1x64xf32>
    %13 = vector.shape_cast %12 : vector<1x64xf32> to vector<1x64xf32>
    %14 = vector.broadcast %13 : vector<1x64xf32> to vector<8x64xf32>
    %15 = vector.extract_strided_slice %5 {offsets = [2, 0], sizes = [1, 32], strides = [1, 1]} : vector<8x128xf32> to vector<1x32xf32>
    %16 = vector.shape_cast %15 : vector<1x32xf32> to vector<1x32xf32>
    %17 = vector.broadcast %16 : vector<1x32xf32> to vector<8x32xf32>
    %18 = vector.extract_strided_slice %5 {offsets = [3, 0], sizes = [1, 32], strides = [1, 1]} : vector<8x128xf32> to vector<1x32xf32>
    %19 = vector.shape_cast %18 : vector<1x32xf32> to vector<1x32xf32>
    %20 = vector.broadcast %19 : vector<1x32xf32> to vector<8x32xf32>
    %21 = vector.extract_strided_slice %5 {offsets = [4, 0], sizes = [1, 32], strides = [1, 1]} : vector<8x128xf32> to vector<1x32xf32>
    %22 = vector.shape_cast %21 : vector<1x32xf32> to vector<1x32xf32>
    %23 = vector.broadcast %22 : vector<1x32xf32> to vector<8x32xf32>
    %24 = vector.extract_strided_slice %5 {offsets = [5, 0], sizes = [1, 32], strides = [1, 1]} : vector<8x128xf32> to vector<1x32xf32>
    %25 = vector.shape_cast %24 : vector<1x32xf32> to vector<1x32xf32>
    %26 = vector.broadcast %25 : vector<1x32xf32> to vector<8x32xf32>
    %27 = vector.extract_strided_slice %5 {offsets = [6, 0], sizes = [1, 32], strides = [1, 1]} : vector<8x128xf32> to vector<1x32xf32>
    %28 = vector.shape_cast %27 : vector<1x32xf32> to vector<1x32xf32>
    %29 = vector.broadcast %28 : vector<1x32xf32> to vector<8x32xf32>
    %cst = arith.constant dense<0.000000e+00> : vector<8x128xf32>
    %30 = tpu.matmul %1, %2, %cst {dimension_numbers = #tpu.dot_dimension_numbers<[1], [0], [0], [1], [0, 0, 1, 1], [], []>} : vector<8x32xf32>, vector<32x128xf32>, vector<8x128xf32> -> vector<8x128xf32>
    %31 = arith.addf %30, %8 : vector<8x128xf32>
    %cst_10 = arith.constant 0.000000e+00 : f32
    %32 = vector.broadcast %cst_10 : f32 to vector<8x32xf32>
    %33 = vector.extract_strided_slice %31 {offsets = [0, 0], sizes = [8, 16], strides = [1, 1]} : vector<8x128xf32> to vector<8x16xf32>
    %34 = vector.extract_strided_slice %31 {offsets = [0, 32], sizes = [8, 16], strides = [1, 1]} : vector<8x128xf32> to vector<8x16xf32>
    %35 = vector.extract_strided_slice %31 {offsets = [0, 64], sizes = [8, 16], strides = [1, 1]} : vector<8x128xf32> to vector<8x16xf32>
    %36 = tpu.transpose %34, [1, 0] : vector<8x16xf32> -> vector<16x8xf32>
    %cst_11 = arith.constant dense<0.000000e+00> : vector<8x8xf32>
    %37 = tpu.matmul %33, %36, %cst_11 {dimension_numbers = #tpu.dot_dimension_numbers<[1], [0], [0], [1], [0, 0, 1, 1], [], []>} : vector<8x16xf32>, vector<16x8xf32>, vector<8x8xf32> -> vector<8x8xf32>
    %cst_12 = arith.constant 2.500000e-01 : f32
    %38 = vector.broadcast %cst_12 : f32 to vector<8x8xf32>
    %39 = arith.mulf %37, %38 : vector<8x8xf32>
    %cst_13 = arith.constant dense<0xFF800000> : vector<8xf32>
    %40 = vector.multi_reduction <maximumf>, %39, %cst_13 [1] : vector<8x8xf32> to vector<8xf32>
    %41 = vector.shape_cast %40 : vector<8xf32> to vector<8x1xf32>
    %42 = vector.broadcast %41 : vector<8x1xf32> to vector<8x8xf32>
    %43 = arith.subf %39, %42 : vector<8x8xf32>
    %44 = math.exp %43 : vector<8x8xf32>
    %cst_14 = arith.constant dense<0.000000e+00> : vector<8xf32>
    %45 = vector.multi_reduction <add>, %44, %cst_14 [1] : vector<8x8xf32> to vector<8xf32>
    %46 = vector.shape_cast %45 : vector<8xf32> to vector<8x1xf32>
    %47 = vector.broadcast %46 : vector<8x1xf32> to vector<8x8xf32>
    %48 = arith.divf %44, %47 : vector<8x8xf32>
    %cst_15 = arith.constant dense<0.000000e+00> : vector<8x16xf32>
    %49 = tpu.matmul %48, %35, %cst_15 {dimension_numbers = #tpu.dot_dimension_numbers<[1], [0], [0], [1], [0, 0, 1, 1], [], []>} : vector<8x8xf32>, vector<8x16xf32>, vector<8x16xf32> -> vector<8x16xf32>
    %50 = vector.extract_strided_slice %2 {offsets = [0, 96], sizes = [16, 32], strides = [1, 1]} : vector<32x128xf32> to vector<16x32xf32>
    %cst_16 = arith.constant dense<0.000000e+00> : vector<8x32xf32>
    %51 = tpu.matmul %49, %50, %cst_16 {dimension_numbers = #tpu.dot_dimension_numbers<[1], [0], [0], [1], [0, 0, 1, 1], [], []>} : vector<8x16xf32>, vector<16x32xf32>, vector<8x32xf32> -> vector<8x32xf32>
    %52 = arith.addf %32, %51 : vector<8x32xf32>
    %53 = vector.extract_strided_slice %31 {offsets = [0, 16], sizes = [8, 16], strides = [1, 1]} : vector<8x128xf32> to vector<8x16xf32>
    %54 = vector.extract_strided_slice %31 {offsets = [0, 48], sizes = [8, 16], strides = [1, 1]} : vector<8x128xf32> to vector<8x16xf32>
    %55 = vector.extract_strided_slice %31 {offsets = [0, 80], sizes = [8, 16], strides = [1, 1]} : vector<8x128xf32> to vector<8x16xf32>
    %56 = tpu.transpose %54, [1, 0] : vector<8x16xf32> -> vector<16x8xf32>
    %cst_17 = arith.constant dense<0.000000e+00> : vector<8x8xf32>
    %57 = tpu.matmul %53, %56, %cst_17 {dimension_numbers = #tpu.dot_dimension_numbers<[1], [0], [0], [1], [0, 0, 1, 1], [], []>} : vector<8x16xf32>, vector<16x8xf32>, vector<8x8xf32> -> vector<8x8xf32>
    %cst_18 = arith.constant 2.500000e-01 : f32
    %58 = vector.broadcast %cst_18 : f32 to vector<8x8xf32>
    %59 = arith.mulf %57, %58 : vector<8x8xf32>
    %cst_19 = arith.constant dense<0xFF800000> : vector<8xf32>
    %60 = vector.multi_reduction <maximumf>, %59, %cst_19 [1] : vector<8x8xf32> to vector<8xf32>
    %61 = vector.shape_cast %60 : vector<8xf32> to vector<8x1xf32>
    %62 = vector.broadcast %61 : vector<8x1xf32> to vector<8x8xf32>
    %63 = arith.subf %59, %62 : vector<8x8xf32>
    %64 = math.exp %63 : vector<8x8xf32>
    %cst_20 = arith.constant dense<0.000000e+00> : vector<8xf32>
    %65 = vector.multi_reduction <add>, %64, %cst_20 [1] : vector<8x8xf32> to vector<8xf32>
    %66 = vector.shape_cast %65 : vector<8xf32> to vector<8x1xf32>
    %67 = vector.broadcast %66 : vector<8x1xf32> to vector<8x8xf32>
    %68 = arith.divf %64, %67 : vector<8x8xf32>
    %cst_21 = arith.constant dense<0.000000e+00> : vector<8x16xf32>
    %69 = tpu.matmul %68, %55, %cst_21 {dimension_numbers = #tpu.dot_dimension_numbers<[1], [0], [0], [1], [0, 0, 1, 1], [], []>} : vector<8x8xf32>, vector<8x16xf32>, vector<8x16xf32> -> vector<8x16xf32>
    %70 = vector.extract_strided_slice %2 {offsets = [16, 96], sizes = [16, 32], strides = [1, 1]} : vector<32x128xf32> to vector<16x32xf32>
    %cst_22 = arith.constant dense<0.000000e+00> : vector<8x32xf32>
    %71 = tpu.matmul %69, %70, %cst_22 {dimension_numbers = #tpu.dot_dimension_numbers<[1], [0], [0], [1], [0, 0, 1, 1], [], []>} : vector<8x16xf32>, vector<16x32xf32>, vector<8x32xf32> -> vector<8x32xf32>
    %72 = arith.addf %52, %71 : vector<8x32xf32>
    %73 = arith.addf %72, %11 : vector<8x32xf32>
    %74 = arith.addf %73, %1 : vector<8x32xf32>
    %cst_23 = arith.constant dense<0.000000e+00> : vector<8xf32>
    %75 = vector.multi_reduction <add>, %74, %cst_23 [1] : vector<8x32xf32> to vector<8xf32>
    %76 = vector.shape_cast %75 : vector<8xf32> to vector<8x1xf32>
    %cst_24 = arith.constant 3.200000e+01 : f32
    %77 = vector.broadcast %cst_24 : f32 to vector<8x1xf32>
    %78 = arith.divf %76, %77 : vector<8x1xf32>
    %79 = vector.broadcast %78 : vector<8x1xf32> to vector<8x32xf32>
    %80 = arith.subf %74, %79 : vector<8x32xf32>
    %81 = arith.mulf %80, %80 : vector<8x32xf32>
    %cst_25 = arith.constant dense<0.000000e+00> : vector<8xf32>
    %82 = vector.multi_reduction <add>, %81, %cst_25 [1] : vector<8x32xf32> to vector<8xf32>
    %83 = vector.shape_cast %82 : vector<8xf32> to vector<8x1xf32>
    %cst_26 = arith.constant 3.200000e+01 : f32
    %84 = vector.broadcast %cst_26 : f32 to vector<8x1xf32>
    %85 = arith.divf %83, %84 : vector<8x1xf32>
    %86 = vector.broadcast %78 : vector<8x1xf32> to vector<8x32xf32>
    %87 = arith.subf %74, %86 : vector<8x32xf32>
    %cst_27 = arith.constant 9.99999974E-6 : f32
    %88 = vector.broadcast %cst_27 : f32 to vector<8x1xf32>
    %89 = arith.addf %85, %88 : vector<8x1xf32>
    %90 = math.rsqrt %89 : vector<8x1xf32>
    %91 = vector.broadcast %90 : vector<8x1xf32> to vector<8x32xf32>
    %92 = arith.mulf %87, %91 : vector<8x32xf32>
    %93 = arith.mulf %92, %20 : vector<8x32xf32>
    %94 = arith.addf %93, %23 : vector<8x32xf32>
    %cst_28 = arith.constant dense<0.000000e+00> : vector<8x64xf32>
    %95 = tpu.matmul %94, %3, %cst_28 {dimension_numbers = #tpu.dot_dimension_numbers<[1], [0], [0], [1], [0, 0, 1, 1], [], []>} : vector<8x32xf32>, vector<32x64xf32>, vector<8x64xf32> -> vector<8x64xf32>
    %96 = arith.addf %95, %14 : vector<8x64xf32>
    %cst_29 = arith.constant 0.000000e+00 : f32
    %97 = vector.broadcast %cst_29 : f32 to vector<8x64xf32>
    %98 = arith.maximumf %96, %97 : vector<8x64xf32>
    %cst_30 = arith.constant dense<0.000000e+00> : vector<8x32xf32>
    %99 = tpu.matmul %98, %4, %cst_30 {dimension_numbers = #tpu.dot_dimension_numbers<[1], [0], [0], [1], [0, 0, 1, 1], [], []>} : vector<8x64xf32>, vector<64x32xf32>, vector<8x32xf32> -> vector<8x32xf32>
    %100 = arith.addf %99, %17 : vector<8x32xf32>
    %101 = arith.addf %94, %100 : vector<8x32xf32>
    %cst_31 = arith.constant dense<0.000000e+00> : vector<8xf32>
    %102 = vector.multi_reduction <add>, %101, %cst_31 [1] : vector<8x32xf32> to vector<8xf32>
    %103 = vector.shape_cast %102 : vector<8xf32> to vector<8x1xf32>
    %cst_32 = arith.constant 3.200000e+01 : f32
    %104 = vector.broadcast %cst_32 : f32 to vector<8x1xf32>
    %105 = arith.divf %103, %104 : vector<8x1xf32>
    %106 = vector.broadcast %105 : vector<8x1xf32> to vector<8x32xf32>
    %107 = arith.subf %101, %106 : vector<8x32xf32>
    %108 = arith.mulf %107, %107 : vector<8x32xf32>
    %cst_33 = arith.constant dense<0.000000e+00> : vector<8xf32>
    %109 = vector.multi_reduction <add>, %108, %cst_33 [1] : vector<8x32xf32> to vector<8xf32>
    %110 = vector.shape_cast %109 : vector<8xf32> to vector<8x1xf32>
    %cst_34 = arith.constant 3.200000e+01 : f32
    %111 = vector.broadcast %cst_34 : f32 to vector<8x1xf32>
    %112 = arith.divf %110, %111 : vector<8x1xf32>
    %113 = vector.broadcast %105 : vector<8x1xf32> to vector<8x32xf32>
    %114 = arith.subf %101, %113 : vector<8x32xf32>
    %cst_35 = arith.constant 9.99999974E-6 : f32
    %115 = vector.broadcast %cst_35 : f32 to vector<8x1xf32>
    %116 = arith.addf %112, %115 : vector<8x1xf32>
    %117 = math.rsqrt %116 : vector<8x1xf32>
    %118 = vector.broadcast %117 : vector<8x1xf32> to vector<8x32xf32>
    %119 = arith.mulf %114, %118 : vector<8x32xf32>
    %120 = arith.mulf %119, %26 : vector<8x32xf32>
    %121 = arith.addf %120, %29 : vector<8x32xf32>
    %cst_36 = arith.constant dense<0.000000e+00> : vector<8x128xf32>
    %122 = tpu.matmul %121, %2, %cst_36 {dimension_numbers = #tpu.dot_dimension_numbers<[1], [0], [0], [1], [0, 0, 1, 1], [], []>} : vector<8x32xf32>, vector<32x128xf32>, vector<8x128xf32> -> vector<8x128xf32>
    %123 = arith.addf %122, %8 : vector<8x128xf32>
    %cst_37 = arith.constant 0.000000e+00 : f32
    %124 = vector.broadcast %cst_37 : f32 to vector<8x32xf32>
    %125 = vector.extract_strided_slice %123 {offsets = [0, 0], sizes = [8, 16], strides = [1, 1]} : vector<8x128xf32> to vector<8x16xf32>
    %126 = vector.extract_strided_slice %123 {offsets = [0, 32], sizes = [8, 16], strides = [1, 1]} : vector<8x128xf32> to vector<8x16xf32>
    %127 = vector.extract_strided_slice %123 {offsets = [0, 64], sizes = [8, 16], strides = [1, 1]} : vector<8x128xf32> to vector<8x16xf32>
    %128 = tpu.transpose %126, [1, 0] : vector<8x16xf32> -> vector<16x8xf32>
    %cst_38 = arith.constant dense<0.000000e+00> : vector<8x8xf32>
    %129 = tpu.matmul %125, %128, %cst_38 {dimension_numbers = #tpu.dot_dimension_numbers<[1], [0], [0], [1], [0, 0, 1, 1], [], []>} : vector<8x16xf32>, vector<16x8xf32>, vector<8x8xf32> -> vector<8x8xf32>
    %cst_39 = arith.constant 2.500000e-01 : f32
    %130 = vector.broadcast %cst_39 : f32 to vector<8x8xf32>
    %131 = arith.mulf %129, %130 : vector<8x8xf32>
    %cst_40 = arith.constant dense<0xFF800000> : vector<8xf32>
    %132 = vector.multi_reduction <maximumf>, %131, %cst_40 [1] : vector<8x8xf32> to vector<8xf32>
    %133 = vector.shape_cast %132 : vector<8xf32> to vector<8x1xf32>
    %134 = vector.broadcast %133 : vector<8x1xf32> to vector<8x8xf32>
    %135 = arith.subf %131, %134 : vector<8x8xf32>
    %136 = math.exp %135 : vector<8x8xf32>
    %cst_41 = arith.constant dense<0.000000e+00> : vector<8xf32>
    %137 = vector.multi_reduction <add>, %136, %cst_41 [1] : vector<8x8xf32> to vector<8xf32>
    %138 = vector.shape_cast %137 : vector<8xf32> to vector<8x1xf32>
    %139 = vector.broadcast %138 : vector<8x1xf32> to vector<8x8xf32>
    %140 = arith.divf %136, %139 : vector<8x8xf32>
    %cst_42 = arith.constant dense<0.000000e+00> : vector<8x16xf32>
    %141 = tpu.matmul %140, %127, %cst_42 {dimension_numbers = #tpu.dot_dimension_numbers<[1], [0], [0], [1], [0, 0, 1, 1], [], []>} : vector<8x8xf32>, vector<8x16xf32>, vector<8x16xf32> -> vector<8x16xf32>
    %142 = vector.extract_strided_slice %2 {offsets = [0, 96], sizes = [16, 32], strides = [1, 1]} : vector<32x128xf32> to vector<16x32xf32>
    %cst_43 = arith.constant dense<0.000000e+00> : vector<8x32xf32>
    %143 = tpu.matmul %141, %142, %cst_43 {dimension_numbers = #tpu.dot_dimension_numbers<[1], [0], [0], [1], [0, 0, 1, 1], [], []>} : vector<8x16xf32>, vector<16x32xf32>, vector<8x32xf32> -> vector<8x32xf32>
    %144 = arith.addf %124, %143 : vector<8x32xf32>
    %145 = vector.extract_strided_slice %123 {offsets = [0, 16], sizes = [8, 16], strides = [1, 1]} : vector<8x128xf32> to vector<8x16xf32>
    %146 = vector.extract_strided_slice %123 {offsets = [0, 48], sizes = [8, 16], strides = [1, 1]} : vector<8x128xf32> to vector<8x16xf32>
    %147 = vector.extract_strided_slice %123 {offsets = [0, 80], sizes = [8, 16], strides = [1, 1]} : vector<8x128xf32> to vector<8x16xf32>
    %148 = tpu.transpose %146, [1, 0] : vector<8x16xf32> -> vector<16x8xf32>
    %cst_44 = arith.constant dense<0.000000e+00> : vector<8x8xf32>
    %149 = tpu.matmul %145, %148, %cst_44 {dimension_numbers = #tpu.dot_dimension_numbers<[1], [0], [0], [1], [0, 0, 1, 1], [], []>} : vector<8x16xf32>, vector<16x8xf32>, vector<8x8xf32> -> vector<8x8xf32>
    %cst_45 = arith.constant 2.500000e-01 : f32
    %150 = vector.broadcast %cst_45 : f32 to vector<8x8xf32>
    %151 = arith.mulf %149, %150 : vector<8x8xf32>
    %cst_46 = arith.constant dense<0xFF800000> : vector<8xf32>
    %152 = vector.multi_reduction <maximumf>, %151, %cst_46 [1] : vector<8x8xf32> to vector<8xf32>
    %153 = vector.shape_cast %152 : vector<8xf32> to vector<8x1xf32>
    %154 = vector.broadcast %153 : vector<8x1xf32> to vector<8x8xf32>
    %155 = arith.subf %151, %154 : vector<8x8xf32>
    %156 = math.exp %155 : vector<8x8xf32>
    %cst_47 = arith.constant dense<0.000000e+00> : vector<8xf32>
    %157 = vector.multi_reduction <add>, %156, %cst_47 [1] : vector<8x8xf32> to vector<8xf32>
    %158 = vector.shape_cast %157 : vector<8xf32> to vector<8x1xf32>
    %159 = vector.broadcast %158 : vector<8x1xf32> to vector<8x8xf32>
    %160 = arith.divf %156, %159 : vector<8x8xf32>
    %cst_48 = arith.constant dense<0.000000e+00> : vector<8x16xf32>
    %161 = tpu.matmul %160, %147, %cst_48 {dimension_numbers = #tpu.dot_dimension_numbers<[1], [0], [0], [1], [0, 0, 1, 1], [], []>} : vector<8x8xf32>, vector<8x16xf32>, vector<8x16xf32> -> vector<8x16xf32>
    %162 = vector.extract_strided_slice %2 {offsets = [16, 96], sizes = [16, 32], strides = [1, 1]} : vector<32x128xf32> to vector<16x32xf32>
    %cst_49 = arith.constant dense<0.000000e+00> : vector<8x32xf32>
    %163 = tpu.matmul %161, %162, %cst_49 {dimension_numbers = #tpu.dot_dimension_numbers<[1], [0], [0], [1], [0, 0, 1, 1], [], []>} : vector<8x16xf32>, vector<16x32xf32>, vector<8x32xf32> -> vector<8x32xf32>
    %164 = arith.addf %144, %163 : vector<8x32xf32>
    %165 = arith.addf %164, %11 : vector<8x32xf32>
    %166 = arith.addf %165, %121 : vector<8x32xf32>
    %cst_50 = arith.constant dense<0.000000e+00> : vector<8xf32>
    %167 = vector.multi_reduction <add>, %166, %cst_50 [1] : vector<8x32xf32> to vector<8xf32>
    %168 = vector.shape_cast %167 : vector<8xf32> to vector<8x1xf32>
    %cst_51 = arith.constant 3.200000e+01 : f32
    %169 = vector.broadcast %cst_51 : f32 to vector<8x1xf32>
    %170 = arith.divf %168, %169 : vector<8x1xf32>
    %171 = vector.broadcast %170 : vector<8x1xf32> to vector<8x32xf32>
    %172 = arith.subf %166, %171 : vector<8x32xf32>
    %173 = arith.mulf %172, %172 : vector<8x32xf32>
    %cst_52 = arith.constant dense<0.000000e+00> : vector<8xf32>
    %174 = vector.multi_reduction <add>, %173, %cst_52 [1] : vector<8x32xf32> to vector<8xf32>
    %175 = vector.shape_cast %174 : vector<8xf32> to vector<8x1xf32>
    %cst_53 = arith.constant 3.200000e+01 : f32
    %176 = vector.broadcast %cst_53 : f32 to vector<8x1xf32>
    %177 = arith.divf %175, %176 : vector<8x1xf32>
    %178 = vector.broadcast %170 : vector<8x1xf32> to vector<8x32xf32>
    %179 = arith.subf %166, %178 : vector<8x32xf32>
    %cst_54 = arith.constant 9.99999974E-6 : f32
    %180 = vector.broadcast %cst_54 : f32 to vector<8x1xf32>
    %181 = arith.addf %177, %180 : vector<8x1xf32>
    %182 = math.rsqrt %181 : vector<8x1xf32>
    %183 = vector.broadcast %182 : vector<8x1xf32> to vector<8x32xf32>
    %184 = arith.mulf %179, %183 : vector<8x32xf32>
    %185 = arith.mulf %184, %20 : vector<8x32xf32>
    %186 = arith.addf %185, %23 : vector<8x32xf32>
    %cst_55 = arith.constant dense<0.000000e+00> : vector<8x64xf32>
    %187 = tpu.matmul %186, %3, %cst_55 {dimension_numbers = #tpu.dot_dimension_numbers<[1], [0], [0], [1], [0, 0, 1, 1], [], []>} : vector<8x32xf32>, vector<32x64xf32>, vector<8x64xf32> -> vector<8x64xf32>
    %188 = arith.addf %187, %14 : vector<8x64xf32>
    %cst_56 = arith.constant 0.000000e+00 : f32
    %189 = vector.broadcast %cst_56 : f32 to vector<8x64xf32>
    %190 = arith.maximumf %188, %189 : vector<8x64xf32>
    %cst_57 = arith.constant dense<0.000000e+00> : vector<8x32xf32>
    %191 = tpu.matmul %190, %4, %cst_57 {dimension_numbers = #tpu.dot_dimension_numbers<[1], [0], [0], [1], [0, 0, 1, 1], [], []>} : vector<8x64xf32>, vector<64x32xf32>, vector<8x32xf32> -> vector<8x32xf32>
    %192 = arith.addf %191, %17 : vector<8x32xf32>
    %193 = arith.addf %186, %192 : vector<8x32xf32>
    %cst_58 = arith.constant dense<0.000000e+00> : vector<8xf32>
    %194 = vector.multi_reduction <add>, %193, %cst_58 [1] : vector<8x32xf32> to vector<8xf32>
    %195 = vector.shape_cast %194 : vector<8xf32> to vector<8x1xf32>
    %cst_59 = arith.constant 3.200000e+01 : f32
    %196 = vector.broadcast %cst_59 : f32 to vector<8x1xf32>
    %197 = arith.divf %195, %196 : vector<8x1xf32>
    %198 = vector.broadcast %197 : vector<8x1xf32> to vector<8x32xf32>
    %199 = arith.subf %193, %198 : vector<8x32xf32>
    %200 = arith.mulf %199, %199 : vector<8x32xf32>
    %cst_60 = arith.constant dense<0.000000e+00> : vector<8xf32>
    %201 = vector.multi_reduction <add>, %200, %cst_60 [1] : vector<8x32xf32> to vector<8xf32>
    %202 = vector.shape_cast %201 : vector<8xf32> to vector<8x1xf32>
    %cst_61 = arith.constant 3.200000e+01 : f32
    %203 = vector.broadcast %cst_61 : f32 to vector<8x1xf32>
    %204 = arith.divf %202, %203 : vector<8x1xf32>
    %205 = vector.broadcast %197 : vector<8x1xf32> to vector<8x32xf32>
    %206 = arith.subf %193, %205 : vector<8x32xf32>
    %cst_62 = arith.constant 9.99999974E-6 : f32
    %207 = vector.broadcast %cst_62 : f32 to vector<8x1xf32>
    %208 = arith.addf %204, %207 : vector<8x1xf32>
    %209 = math.rsqrt %208 : vector<8x1xf32>
    %210 = vector.broadcast %209 : vector<8x1xf32> to vector<8x32xf32>
    %211 = arith.mulf %206, %210 : vector<8x32xf32>
    %212 = arith.mulf %211, %26 : vector<8x32xf32>
    %213 = arith.addf %212, %29 : vector<8x32xf32>
    %c0_63 = arith.constant 0 : index
    %c0_64 = arith.constant 0 : index
    %c0_65 = arith.constant 0 : index
    %214 = vector.load %arg6[%c0_63, %c0_64, %c0_65] : memref<1x8x32xf32, #tpu.memory_space<vmem>>, vector<1x8x32xf32>
    %215 = vector.shape_cast %214 : vector<1x8x32xf32> to vector<8x32xf32>
    %216 = vector.shape_cast %213 : vector<8x32xf32> to vector<1x8x32xf32>
    tpu.vector_store %arg6[%c0_63, %c0_64, %c0_65], %216 {strides = array<i32>} : memref<1x8x32xf32, #tpu.memory_space<vmem>>, vector<1x8x32xf32>,
    return
  }
  func.func @transform_0(%arg0: i32) -> (i32, i32, i32) {
    %c0_i32 = arith.constant 0 : i32
    %c0_i32_0 = arith.constant 0 : i32
    %c0_i32_1 = arith.constant 0 : i32
    return %arg0, %c0_i32, %c0_i32_0 : i32, i32, i32
  }
  func.func @transform_1(%arg0: i32) -> (i32, i32) {
    %c0_i32 = arith.constant 0 : i32
    %c0_i32_0 = arith.constant 0 : i32
    %c0_i32_1 = arith.constant 0 : i32
    return %c0_i32, %c0_i32_0 : i32, i32
  }
  func.func @transform_2(%arg0: i32) -> (i32, i32) {
    %c0_i32 = arith.constant 0 : i32
    %c0_i32_0 = arith.constant 0 : i32
    %c0_i32_1 = arith.constant 0 : i32
    return %c0_i32, %c0_i32_0 : i32, i32
  }
  func.func @transform_3(%arg0: i32) -> (i32, i32) {
    %c0_i32 = arith.constant 0 : i32
    %c0_i32_0 = arith.constant 0 : i32
    %c0_i32_1 = arith.constant 0 : i32
    return %c0_i32, %c0_i32_0 : i32, i32
  }
  func.func @transform_4(%arg0: i32) -> (i32, i32) {
    %c0_i32 = arith.constant 0 : i32
    %c0_i32_0 = arith.constant 0 : i32
    %c0_i32_1 = arith.constant 0 : i32
    return %c0_i32, %c0_i32_0 : i32, i32
  }
  func.func @transform_5(%arg0: i32) -> (i32, i32, i32) {
    %c0_i32 = arith.constant 0 : i32
    %c0_i32_0 = arith.constant 0 : i32
    %c0_i32_1 = arith.constant 0 : i32
    return %arg0, %c0_i32, %c0_i32_0 : i32, i32, i32
  }
}

</mosaic_0001>

<bundles_post_ra>
// kernel: tpu_custom_call.1
= control target key start
LH: loop header
LB: loop body
LE: loop exit
PB: predicated region body
PF: predicated region fallthrough
CT: control target
= control target key end

     0   :  { %10 = vsyncpa [#allocation3], 0  ;;  %s2659_s0 = inlined_call_operand.vmem [shape: f32[2,8,32], index: 0, kind: input, shape index: {}]   ;;  %s2660_s1 = inlined_call_operand.vmem [shape: f32[32,128], index: 1, kind: input, shape index: {}]   ;;  %s2661_s2 = inlined_call_operand.vmem [shape: f32[32,64], index: 2, kind: input, shape index: {}]   ;;  %s2662_s3 = inlined_call_operand.vmem [shape: f32[64,32], index: 3, kind: input, shape index: {}]   ;;  %s2663_s4 = inlined_call_operand.vmem [shape: f32[8,128], index: 4, kind: input, shape index: {}]   ;;  %s2664_s5 = inlined_call_operand.hbm [shape: f32[2,8,32], index: 5, kind: output, shape index: {}]  }
   0x1   :  { %12 = vsyncpa [#allocation3 + $0x1], 0  ;;  %s2245_s18 = smov 0   ;;  %s2247_s19 = smov 0  }
   0x2   :  { %s2249_s20 = smov 0   ;;  %s2251_s21 = smov 0  }
   0x3 LB: > { %s2266_s22 = sadd.s32 4294967295, %s2204_s21   ;;  %s1825_s23 = sadd.s32 4294967294, %s2204_s21   ;;  %s2204_s21 = sphi %s2251_s21, %s2670_s21   ;;  %s2200_s20 = sphi %s2249_s20, %s2669_s20   ;;  %s2196_s19 = sphi %s2247_s19, %s2668_s19   ;;  %s2192_s18 = sphi %s2245_s18, %s2667_s18  }
   0x4   : > { %s2270_s24 = sadd.s32 1, %s2204_s21   ;;  %s135_s25 = sadd.s32 1, %s2200_s20 }
   0x5   : > { %s132_s26 = ssub.s32 %s2204_s21, %s2270_s24  ;;  %p145_p0 = scmp.ne.s32.totalorder %s2200_s20, %s2196_s19 }
   0x6   : > { %p133_p1 = scmp.eq.s32.totalorder %s132_s26, 0  ;;  %p146_p2 = scmp.eq.s32.totalorder %s2266_s22, 1 }
   0x7   : > { %p151_p3 = scmp.ne.s32.totalorder %s2196_s19, %s2192_s18  ;;  %p152_p4 = scmp.eq.s32.totalorder %s1825_s23, 1 }
   0x8   : > { %s2281_s27 = scalar_select %p133_p1, %s2200_s20, %s135_s25  }
   0x9   : > { %p2283_p5 = por %p146_p2, %p145_p0  ;;  %p2287_p6 = por %p152_p4, %p151_p3 }
   0xa   : > { %p1828_p7 = scmp.ge.s32.totalorder %s2204_s21, 1  ;;  %p189_p8 = scmp.lt.s32.totalorder %s2204_s21, 3 }
   0xc   : > { %p190_p9 = pnand %p1828_p7, %p189_p8 }
   0xd   : > { %p216_p10 = scmp.lt.s32.totalorder (!%p190_p9), %s2266_s22, 1  ;;  %s2208_s26 = smov (!%p190_p9), 112  }
   0xe   : > { %193 = sbr.rel (%p190_p9) target bundleno = 4493 (0x118d), region = 40  ;;  %s2209_s30 = smov (!%p190_p9), 96  }
   0xf   : > { %s2210_s6 = smov (!%p190_p9), 80   ;;  %s2211_s7 = smov (!%p190_p9), 48  }
  0x10   : > { %s2212_s8 = smov (!%p190_p9), 64  }
  0x13   : > { %v2296_v0 = vld [vmem:[%s2660_s1 + $0x18] sm:$0xff]  ;;  %v2206_v1 = vmov 0.0   ;;  %v2303_v2 = vld [vmem:[%s2660_s1 + $0x10] sm:$0xff]  ;;  %vm2207_vm0 = vmmov 0   ;;  %s217_s9 = scalar_select %p216_p10, %s2266_s22, 1  ;;  %v2314_v3 = vld [vmem:[%s2660_s1 + $0x8] sm:$0xff]  ;;  %v238_v6 = vlaneseq }
  0x14   : > { %1923 = vmatprep.subr.mxu0 %v2206_v1  ;;  %1931 = vmatprep.mubr.msk.f32.mxu0 %vm2207_vm0, %v2206_v1  ;;  %v2323_v4 = vld [vmem:[%s2660_s1] sm:$0xff]  ;;  %vm266_vm1 = vcmask 261120   ;;  %vm343_vm2 = vcmask 130048   ;;  %vm419_vm3 = vcmask 64512   ;;  %vm931_vm4 = vcmask 523264  }
  0x15   : > { %1924 = vmatpush3.msra.mxu0 %v2296_v0  ;;  %1939 = vmatprep.subr.mxu1 %v2206_v1  ;;  %s1830_s12 = sshll.u32 %s217_s9, 3  ;;  %v2338_v7 = vshrl.u32 %v238_v6, 7  ;;  %v2344_v9 = vld [vmem:[%s2663_s4] sm:$0xff]  ;;  %s2213_s9 = smov 32  }
  0x16   : > { %1925 = vmatprep.subr.mxu0 %v2206_v1  ;;  %1941 = vmatprep.mubr.msk.f32.mxu1 %vm2207_vm0, %v2206_v1  ;;  %s219_s17 = scalar_lea.vmem %s2659_s0, %s1830_s12 }
  0x17   : > { %1926 = vmatpush3.msra.mxu0 %v2303_v2  ;;  %v2329_v5 = vld [vmem:[%s219_s17] sm:$0xff]  ;;  %v240_v8 = vsub.s32 0, %v2338_v7 }
  0x18   : > { %1927 = vmatprep.subr.mxu0 %v2206_v1 }
  0x19   : > { %1928 = vmatpush3.msra.mxu0 %v2314_v3  ;;  %v2347_v10 = vrot.slane %v2344_v9, %v240_v8  ;;  %v2413_v8 = vld [vmem:[%s2661_s2 + $0x18] sm:$0xff] }
  0x1a   : > { %1929 = vmatprep.subr.mxu0 %v2206_v1 }
  0x1b   : > { %1930 = vmatpush3.msra.mxu0 %v2323_v4 }
  0x1c   : > { %1932 = vmatmul.mubr.msk.f32.vlgmr.msra.gmra.mxu0 %vm266_vm1, %v2329_v5  ;;  %1934 = vmatprep.subr.mxu0 %v2206_v1 }
  0x1d   : > { %1936 = vmatprep.mubr.msk.f32.mxu0 %vm2207_vm0, %v2206_v1 }
  0xdc   : > { %v336_v11 = vpop.f32.mrf.mxu0 }
  0xdd   : > { %v337_v12 = vadd.f32 %v336_v11, %v2347_v10  ;;  %v2425_v11 = vld [vmem:[%s2661_s2 + $0x8] sm:$0xff] }
  0xde   : > { %v1933_v13 = vpop.f32.mrf.mxu0 }
  0xdf   : > { %507 = vrot.lane.b32.xlu1 %v337_v12, %s2208_s26  ;;  %341 = vrot.lane.b32.xlu0 %v337_v12, %s2209_s30  ;;  %v2440_v13 = vld [vmem:[%s2662_s3 + $0x38] sm:$0xff] }
  0xe3   : > { %509 = vrot.lane.b32.xlu0 %v337_v12, %s2210_s6 }
 0x151   : > { %v342_v14 = vpop.permute.xlu0 %341  ;;  %v508_v16 = vpop.permute.xlu1 %507 }
 0x152   : > { %1935 = vmatpush3.xpose.msk.msra.mxu0 %vm343_vm2, %v342_v14  ;;  %v2445_v14 = vld [vmem:[%s2662_s3 + $0x30] sm:$0xff] }
 0x153   : > { %1944 = vmatprep.subr.mxu0 %v2206_v1 }
 0x155   : > { %1937 = vmatmul.mubr.msk.f32.vlgmr.msra.gmra.mxu0 %vm343_vm2, %v337_v12  ;;  %v510_v15 = vpop.permute.xlu0 %509 }
 0x156   : > { %1945 = vmatpush3.xpose.msk.msra.mxu0 %vm343_vm2, %v510_v15  ;;  %1946 = vmatprep.mubr.msk.f32.mxu0 %vm2207_vm0, %v2206_v1  ;;  %v2453_v15 = vld [vmem:[%s2662_s3 + $0x28] sm:$0xff] }
 0x157   : > { %1954 = vmatprep.subr.mxu0 %v2206_v1 }
 0x159   : > { %1947 = vmatmul.mubr.msk.f32.vlgmr.msra.gmra.mxu0 %vm343_vm2, %v508_v16  ;;  %v2460_v16 = vld [vmem:[%s2662_s3 + $0x20] sm:$0xff] }
 0x15a   : > { %1958 = vmatprep.mubr.msk.f32.mxu0 %vm2207_vm0, %v2206_v1 }
 0x215   : > { %v414_v17 = vpop.f32.mrf.mxu0 }
 0x216   : > { %v418_v18 = vmul.f32 0.25, %v414_v17  ;;  %v2467_v17 = vld [vmem:[%s2662_s3 + $0x18] sm:$0xff] }
 0x217   : > { %v1938_v19 = vpop.f32.mrf.mxu0 }
 0x218   : > { %v420_v20 = vsel %vm419_vm3, %v418_v18, -inf }
 0x219   : > { %421 = vmax.xlane.f32.xlu1 %v420_v20  ;;  %v581_v21 = vpop.f32.mrf.mxu0 }
 0x21a   : > { %v585_v22 = vmul.f32 0.25, %v581_v21  ;;  %v252_v21 = vsub.s32 3, %v2338_v7 }
 0x21b   : > { %v1948_v23 = vpop.f32.mrf.mxu0 }
 0x21c   : > { %v586_v24 = vsel %vm419_vm3, %v585_v22, -inf  ;;  %v2476_v23 = vrot.slane %v2344_v9, %v252_v21 }
 0x21d   : > { %587 = vmax.xlane.f32.xlu0 %v586_v24 }
 0x2a2   : > { %v422_v25 = vpop.xlane.xlu1 %421 }
 0x2a3   : > { %v423_v26 = vsub.f32 %v418_v18, %v422_v25 }
 0x2a5   : > { %v424_v27 = vmul.f32 1.442695, %v423_v26 }
 0x2a6   : > { %v588_v28 = vpop.xlane.xlu0 %587 }
 0x2a7   : > { %2120 = vpow2.f32 %v424_v27  ;;  %v589_v29 = vsub.f32 %v585_v22, %v588_v28  ;;  %v256_v22 = vsub.s32 4, %v2338_v7 }
 0x2a9   : > { %v590_v30 = vmul.f32 1.442695, %v589_v29  ;;  %v2479_v26 = vrot.slane %v2344_v9, %v256_v22 }
 0x2ab   : > { %2122 = vpow2.f32 %v590_v30 }
 0x2b4   : > { %v2121_v31 = vpop.eup %2120 }
 0x2b5   : > { %v426_v32 = vsel %vm419_vm3, %v2121_v31, 0.0 }
 0x2b6   : > { %427 = vadd.xlane.f32.xlu0 %v426_v32 }
 0x2b8   : > { %v2123_v33 = vpop.eup %2122 }
 0x2b9   : > { %v592_v34 = vsel %vm419_vm3, %v2123_v33, 0.0 }
 0x2ba   : > { %593 = vadd.xlane.f32.xlu1 %v592_v34  ;;  %v248_v34 = vsub.s32 2, %v2338_v7 }
 0x2cb   : > { %597 = vrot.lane.b32.xlu1 %v337_v12, %s2211_s7 }
 0x2cc   : > { %431 = vrot.lane.b32.xlu0 %v337_v12, %s2212_s8  ;;  %v2432_v12 = vld [vmem:[%s2661_s2] sm:$0xff] }
 0x2cf   : > { %677 = vrot.lane.b32.xlu1 %v2296_v0, %s2213_s9 }
 0x2d0   : > { %758 = vrot.lane.b32.xlu0 %v2314_v3, %s2213_s9 }
 0x2d3   : > { %675 = vrot.lane.b32.xlu1 %v2303_v2, %s2213_s9 }
 0x2d4   : > { %756 = vrot.lane.b32.xlu0 %v2323_v4, %s2213_s9 }
 0x2d7   : > { %836 = vrot.lane.b32.xlu1 %v2347_v10, %s2213_s9 }
 0x33f   : > { %v428_v35 = vpop.xlane.xlu0 %427 }
 0x340   : > { %2124 = vrcp.f32 %v428_v35  ;;  %v2525_v35 = vrot.slane %v2344_v9, %v248_v34 }
 0x343   : > { %v594_v36 = vpop.xlane.xlu1 %593  ;;  %v432_v37 = vpop.permute.xlu0 %431 }
 0x344   : > { %2126 = vrcp.f32 %v594_v36  ;;  %1940 = vmatpush3.msra.mxu1 %v432_v37 }
 0x345   : > { %1949 = vmatprep.subr.mxu1 %v2206_v1 }
 0x347   : > { %v598_v38 = vpop.permute.xlu1 %597  ;;  %v2379_v42 = vpop.permute.xlu0 %758 }
 0x34b   : > { %v2375_v39 = vpop.permute.xlu1 %677  ;;  %v2386_v45 = vpop.permute.xlu0 %756 }
 0x34c   : > { %1955 = vmatpush3.msra.mxu0 %v2375_v39 }
 0x34d   : > { %v2125_v40 = vpop.eup %2124  ;;  %1956 = vmatprep.subr.mxu0 %v2206_v1 }
 0x34e   : > { %v430_v41 = vmul.f32 %v2125_v40, %v2121_v31 }
 0x34f   : > { %v2394_v46 = vpop.permute.xlu1 %675 }
 0x350   : > { %1942 = vmatmul.mubr.msk.f32.vlgmr.msra.gmra.mxu1 %vm419_vm3, %v430_v41  ;;  %1957 = vmatpush3.msra.mxu0 %v2394_v46 }
 0x351   : > { %v2127_v43 = vpop.eup %2126  ;;  %1950 = vmatpush3.msra.mxu1 %v598_v38  ;;  %1951 = vmatprep.mubr.msk.f32.mxu1 %vm2207_vm0, %v2206_v1 }
 0x352   : > { %v596_v44 = vmul.f32 %v2127_v43, %v2123_v33  ;;  %1961 = vmatprep.subr.mxu1 %v2206_v1  ;;  %1968 = vmatprep.subr.mxu0 %v2206_v1 }
 0x353   : > { %v2404_v54 = vpop.permute.xlu1 %836 }
 0x354   : > { %1952 = vmatmul.mubr.msk.f32.vlgmr.msra.gmra.mxu1 %vm419_vm3, %v596_v44 }
 0x355   : > { %1962 = vmatpush3.msra.mxu1 %v2379_v42  ;;  %1965 = vmatprep.mubr.msk.f32.mxu1 %vm2207_vm0, %v2206_v1 }
 0x356   : > { %1963 = vmatprep.subr.mxu1 %v2206_v1 }
 0x357   : > { %1964 = vmatpush3.msra.mxu1 %v2386_v45 }
 0x358   : > { %1979 = vmatprep.subr.mxu1 %v2206_v1 }
 0x410   : > { %v503_v47 = vpop.f32.mrf.mxu1 }
 0x411   : > { %1966 = vmatmul.mubr.msk.f32.vlgmr.msra.gmra.mxu1 %vm343_vm2, %v503_v47 }
 0x412   : > { %v1943_v48 = vpop.f32.mrf.mxu1  ;;  %1995 = vmatprep.mubr.msk.f32.mxu1 %vm2207_vm0, %v2206_v1  ;;  %1980 = vmatpush3.msra.mxu1 %v2440_v13 }
 0x413   : > { %1981 = vmatprep.subr.mxu1 %v2206_v1 }
 0x414   : > { %v669_v49 = vpop.f32.mrf.mxu1  ;;  %1982 = vmatpush3.msra.mxu1 %v2445_v14 }
 0x415   : > { %1959 = vmatmul.mubr.msk.f32.vlgmr.msra.gmra.mxu0 %vm343_vm2, %v669_v49  ;;  %1983 = vmatprep.subr.mxu1 %v2206_v1 }
 0x416   : > { %v1953_v50 = vpop.f32.mrf.mxu1  ;;  %1976 = vmatprep.mubr.msk.f32.mxu0 %vm2207_vm0, %v2206_v1  ;;  %1969 = vmatpush3.msra.mxu0 %v2413_v8 }
 0x417   : > { %1970 = vmatprep.subr.mxu0 %v2206_v1  ;;  %1984 = vmatpush3.msra.mxu1 %v2453_v15 }
 0x418   : > { %1985 = vmatprep.subr.mxu1 %v2206_v1 }
 0x419   : > { %1986 = vmatpush3.msra.mxu1 %v2460_v16 }
 0x41a   : > { %1987 = vmatprep.subr.mxu1 %v2206_v1 }
 0x41b   : > { %1988 = vmatpush3.msra.mxu1 %v2467_v17 }
 0x41c   : > { %1989 = vmatprep.subr.mxu1 %v2206_v1 }
 0x4d1   : > { %v831_v51 = vpop.f32.mrf.mxu1 }
 0x4d3   : > { %v1967_v52 = vpop.f32.mrf.mxu1 }
 0x4d5   : > { %v750_v53 = vpop.f32.mrf.mxu0 }
 0x4d6   : > { %v832_v55 = vadd.f32 %v831_v51, %v750_v53  ;;  %v260_v53 = vsub.s32 5, %v2338_v7 }
 0x4d7   : > { %v1960_v56 = vpop.f32.mrf.mxu0 }
 0x4d8   : > { %v839_v57 = vadd.f32 %v2404_v54, %v832_v55  ;;  %v264_v55 = vsub.s32 6, %v2338_v7  ;;  %v2533_v56 = vrot.slane %v2344_v9, %v260_v53 }
 0x4da   : > { %v840_v58 = vadd.f32 %v839_v57, %v2329_v5  ;;  %v2419_v5 = vld [vmem:[%s2661_s2 + $0x10] sm:$0xff] }
 0x4db   : > { %1971 = vmatpush3.msra.mxu0 %v2419_v5 }
 0x4dc   : > { %v841_v59 = vsel %vm266_vm1, %v840_v58, 0.0  ;;  %1972 = vmatprep.subr.mxu0 %v2206_v1 }
 0x4dd   : > { %842 = vadd.xlane.f32.xlu0 %v841_v59  ;;  %1973 = vmatpush3.msra.mxu0 %v2425_v11  ;;  %v2536_v59 = vrot.slane %v2344_v9, %v264_v55 }
 0x4de   : > { %1974 = vmatprep.subr.mxu0 %v2206_v1 }
 0x4df   : > { %1975 = vmatpush3.msra.mxu0 %v2432_v12 }
 0x4e0   : > { %1998 = vmatprep.subr.mxu0 %v2206_v1 }
 0x566   : > { %v843_v60 = vpop.xlane.xlu0 %842 }
 0x567   : > { %v845_v61 = vmul.f32 0.03125, %v843_v60 }
 0x569   : > { %v846_v62 = vsub.f32 %v840_v58, %v845_v61 }
 0x56b   : > { %v847_v63 = vmul.f32 %v846_v62, %v846_v62 }
 0x56d   : > { %v848_v6 = vsel %vm266_vm1, %v847_v63, 0.0 }
 0x56e   : > { %849 = vadd.xlane.f32.xlu1 %v848_v6 }
 0x5f7   : > { %v850_v18 = vpop.xlane.xlu1 %849 }
 0x5f8   : > { %v851_v19 = vmul.f32 0.03125, %v850_v18 }
 0x5fa   : > { %v852_v20 = vadd.f32 1e-05, %v851_v19 }
 0x5fc   : > { %2128 = vrsqrt.f32 %v852_v20 }
 0x609   : > { %v2129_v24 = vpop.eup %2128 }
 0x60a   : > { %v854_v25 = vmul.f32 %v2129_v24, %v846_v62 }
 0x60c   : > { %v855_v27 = vmul.f32 %v854_v25, %v2476_v23 }
 0x60e   : > { %v856_v28 = vadd.f32 %v855_v27, %v2479_v26 }
 0x610   : > { %1977 = vmatmul.mubr.msk.f32.vlgmr.msra.gmra.mxu0 %vm266_vm1, %v856_v28 }
 0x611   : > { %1999 = vmatpush3.msra.mxu0 %v2296_v0  ;;  %2006 = vmatprep.mubr.msk.f32.mxu0 %vm2207_vm0, %v2206_v1  ;;  %v2497_v0 = vld [vmem:[%s2662_s3 + $0x10] sm:$0xff] }
 0x612   : > { %2000 = vmatprep.subr.mxu0 %v2206_v1  ;;  %1990 = vmatpush3.msra.mxu1 %v2497_v0 }
 0x613   : > { %2001 = vmatpush3.msra.mxu0 %v2303_v2  ;;  %1991 = vmatprep.subr.mxu1 %v2206_v1  ;;  %v2504_v2 = vld [vmem:[%s2662_s3 + $0x8] sm:$0xff] }
 0x614   : > { %2002 = vmatprep.subr.mxu0 %v2206_v1  ;;  %1992 = vmatpush3.msra.mxu1 %v2504_v2 }
 0x615   : > { %2003 = vmatpush3.msra.mxu0 %v2314_v3  ;;  %v2510_v3 = vld [vmem:[%s2662_s3] sm:$0xff]  ;;  %1993 = vmatprep.subr.mxu1 %v2206_v1 }
 0x616   : > { %2004 = vmatprep.subr.mxu0 %v2206_v1  ;;  %1994 = vmatpush3.msra.mxu1 %v2510_v3 }
 0x617   : > { %2005 = vmatpush3.msra.mxu0 %v2323_v4  ;;  %2014 = vmatprep.subr.mxu1 %v2206_v1  ;;  %v244_v4 = vsub.s32 1, %v2338_v7 }
 0x618   : > { %2009 = vmatprep.subr.mxu0 %v2206_v1 }
 0x619   : > { %v2517_v29 = vrot.slane %v2344_v9, %v244_v4 }
 0x6d0   : > { %v926_v30 = vpop.f32.mrf.mxu0 }
 0x6d1   : > { %v927_v31 = vadd.f32 %v926_v30, %v2517_v29 }
 0x6d2   : > { %v1978_v32 = vpop.f32.mrf.mxu0 }
 0x6d3   : > { %v930_v33 = vmax.f32 %v927_v31, 0.0 }
 0x6d5   : > { %1996 = vmatmul.mubr.msk.f32.vlgmr.msra.gmra.mxu1 %vm931_vm4, %v930_v33 }
 0x6d6   : > { %2016 = vmatprep.mubr.msk.f32.mxu1 %vm2207_vm0, %v2206_v1 }
 0x795   : > { %v1001_v36 = vpop.f32.mrf.mxu1 }
 0x796   : > { %v1002_v37 = vadd.f32 %v1001_v36, %v2525_v35 }
 0x797   : > { %v1997_v38 = vpop.f32.mrf.mxu1 }
 0x798   : > { %v1005_v40 = vadd.f32 %v1002_v37, %v856_v28 }
 0x79a   : > { %v1006_v41 = vsel %vm266_vm1, %v1005_v40, 0.0 }
 0x79b   : > { %1007 = vadd.xlane.f32.xlu0 %v1006_v41 }
 0x824   : > { %v1008_v43 = vpop.xlane.xlu0 %1007 }
 0x825   : > { %v1009_v44 = vmul.f32 0.03125, %v1008_v43 }
 0x827   : > { %v1010_v47 = vsub.f32 %v1005_v40, %v1009_v44 }
 0x829   : > { %v1011_v48 = vmul.f32 %v1010_v47, %v1010_v47 }
 0x82b   : > { %v1012_v49 = vsel %vm266_vm1, %v1011_v48, 0.0 }
 0x82c   : > { %1013 = vadd.xlane.f32.xlu0 %v1012_v49 }
 0x8b5   : > { %v1014_v50 = vpop.xlane.xlu0 %1013 }
 0x8b6   : > { %v1015_v51 = vmul.f32 0.03125, %v1014_v50 }
 0x8b8   : > { %v1016_v52 = vadd.f32 1e-05, %v1015_v51 }
 0x8ba   : > { %2130 = vrsqrt.f32 %v1016_v52 }
 0x8c7   : > { %v2131_v57 = vpop.eup %2130 }
 0x8c8   : > { %v1018_v58 = vmul.f32 %v2131_v57, %v1010_v47 }
 0x8ca   : > { %v1019_v60 = vmul.f32 %v1018_v58, %v2533_v56 }
 0x8cc   : > { %v2540_v61 = vadd.f32 %v1019_v60, %v2536_v59 }
 0x8ce   : > { %2007 = vmatmul.mubr.msk.f32.vlgmr.msra.gmra.mxu0 %vm266_vm1, %v2540_v61 }
 0x8cf   : > { %2011 = vmatprep.mubr.msk.f32.mxu0 %vm2207_vm0, %v2206_v1 }
 0x98e   : > { %v1090_v7 = vpop.f32.mrf.mxu0 }
 0x98f   : > { %v1091_v62 = vadd.f32 %v1090_v7, %v2347_v10 }
 0x990   : > { %v2008_v63 = vpop.f32.mrf.mxu0 }
 0x991   : > { %1261 = vrot.lane.b32.xlu0 %v1091_v62, %s2210_s6  ;;  %1095 = vrot.lane.b32.xlu1 %v1091_v62, %s2209_s30  ;;  %s1854_s6 = sshll.u32 %s2266_s22, 7  ;;  %s2214_s22 = smov [#allocation2]  }
 0x992   : > { %s1764_s14 = scalar_lea.hbm %s2664_s5, %s1854_s6  ;;  %s2148_s17 = sshll.u32 %s2214_s22, 4  ;;  %s2149_s17 = int_to_ptr.vmem [resolvable:$false] %s2148_s17 }
 0x993   : > { %s2150_s23 = scalar_lea.vmem %s2149_s17, 256 }
 0x995   : > { %1259 = vrot.lane.b32.xlu1 %v1091_v62, %s2208_s26  ;;  %s213_s26 = sand.u32 1, %s2196_s19  }
 0x996   : > { %s1829_s30 = sshll.u32 %s213_s26, 3  ;;  %s1753_s15 = scalar_lea.sflag [#allocation3], %s213_s26 }
 0xa03   : > { %v1096_v9 = vpop.permute.xlu1 %1095  ;;  %v1262_v6 = vpop.permute.xlu0 %1261 }
 0xa04   : > { %2010 = vmatpush3.xpose.msk.msra.mxu0 %vm343_vm2, %v1096_v9 }
 0xa05   : > { %2019 = vmatprep.subr.mxu0 %v2206_v1 }
 0xa07   : > { %2012 = vmatmul.mubr.msk.f32.vlgmr.msra.gmra.mxu0 %vm343_vm2, %v1091_v62  ;;  %v1260_v10 = vpop.permute.xlu1 %1259 }
 0xa08   : > { %2020 = vmatpush3.xpose.msk.msra.mxu0 %vm343_vm2, %v1262_v6  ;;  %2021 = vmatprep.mubr.msk.f32.mxu0 %vm2207_vm0, %v2206_v1 }
 0xa09   : > { %2029 = vmatprep.subr.mxu0 %v2206_v1 }
 0xa0b   : > { %2022 = vmatmul.mubr.msk.f32.vlgmr.msra.gmra.mxu0 %vm343_vm2, %v1260_v10 }
 0xa0c   : > { %2030 = vmatpush3.msra.mxu0 %v2375_v39  ;;  %2033 = vmatprep.mubr.msk.f32.mxu0 %vm2207_vm0, %v2206_v1 }
 0xa0d   : > { %2031 = vmatprep.subr.mxu0 %v2206_v1 }
 0xa0e   : > { %2032 = vmatpush3.msra.mxu0 %v2394_v46 }
 0xa0f   : > { %2043 = vmatprep.subr.mxu0 %v2206_v1 }
 0xac7   : > { %v1167_v18 = vpop.f32.mrf.mxu0 }
 0xac8   : > { %v1171_v19 = vmul.f32 0.25, %v1167_v18 }
 0xac9   : > { %v2013_v20 = vpop.f32.mrf.mxu0 }
 0xaca   : > { %v1172_v21 = vsel %vm419_vm3, %v1171_v19, -inf }
 0xacb   : > { %1173 = vmax.xlane.f32.xlu1 %v1172_v21  ;;  %v1333_v22 = vpop.f32.mrf.mxu0 }
 0xacc   : > { %v1337_v24 = vmul.f32 0.25, %v1333_v22 }
 0xacd   : > { %v2023_v25 = vpop.f32.mrf.mxu0 }
 0xace   : > { %v1338_v39 = vsel %vm419_vm3, %v1337_v24, -inf }
 0xacf   : > { %1339 = vmax.xlane.f32.xlu0 %v1338_v39 }
 0xb54   : > { %v1174_v27 = vpop.xlane.xlu1 %1173 }
 0xb55   : > { %v1175_v28 = vsub.f32 %v1171_v19, %v1174_v27 }
 0xb57   : > { %v1176_v4 = vmul.f32 1.442695, %v1175_v28 }
 0xb58   : > { %v1340_v30 = vpop.xlane.xlu0 %1339 }
 0xb59   : > { %2132 = vpow2.f32 %v1176_v4  ;;  %v1341_v46 = vsub.f32 %v1337_v24, %v1340_v30 }
 0xb5b   : > { %v1342_v31 = vmul.f32 1.442695, %v1341_v46 }
 0xb5d   : > { %2134 = vpow2.f32 %v1342_v31 }
 0xb66   : > { %v2133_v32 = vpop.eup %2132 }
 0xb67   : > { %v1178_v33 = vsel %vm419_vm3, %v2133_v32, 0.0 }
 0xb68   : > { %1179 = vadd.xlane.f32.xlu0 %v1178_v33 }
 0xb6a   : > { %v2135_v34 = vpop.eup %2134 }
 0xb6b   : > { %v1344_v36 = vsel %vm419_vm3, %v2135_v34, 0.0 }
 0xb6c   : > { %1345 = vadd.xlane.f32.xlu1 %v1344_v36 }
 0xb7d   : > { %1349 = vrot.lane.b32.xlu1 %v1091_v62, %s2211_s7  ;;  %s215_s7 = scalar_lea.vmem [#allocation2], %s1829_s30 }
 0xb7e   : > { %1183 = vrot.lane.b32.xlu0 %v1091_v62, %s2212_s8  ;;  %s1766_s8 = sshll.u32 %s215_s7, 4  ;;  %s1767_s8 = int_to_ptr.vmem [resolvable:$true] %s1766_s8 }
 0xb7f   : > { %s2144_s16 = scalar_lea.vmem %s1767_s8, 128  ;;  %p2151_p0 = scmp.lt.s32.totalorder %s1767_s8, %s2149_s17 }
 0xb80   : > { %p2145_p11 = scmp.ne.s32.totalorder %s1767_s8, %s2144_s16  ;;  %p2152_p1 = scmp.lt.s32.totalorder %s2150_s23, %s2144_s16 }
 0xb82   : > { %p2146_p12 = pnand %p2145_p11, %p2283_p5  ;;  %p2153_p2 = por %p2152_p1, %p2151_p0 }
 0xb84   : > { %p2147_p13 = pneg %p2146_p12 }
 0xb86   : > { %p2154_p3 = pnand %p2153_p2, %p2147_p13 }
 0xbf1   : > { %v1180_v37 = vpop.xlane.xlu0 %1179 }
 0xbf2   : > { %2136 = vrcp.f32 %v1180_v37 }
 0xbf5   : > { %v1346_v38 = vpop.xlane.xlu1 %1345  ;;  %v1184_v40 = vpop.permute.xlu0 %1183 }
 0xbf6   : > { %2138 = vrcp.f32 %v1346_v38  ;;  %2015 = vmatpush3.msra.mxu1 %v1184_v40 }
 0xbf7   : > { %2024 = vmatprep.subr.mxu1 %v2206_v1 }
 0xbf9   : > { %v1350_v44 = vpop.permute.xlu1 %1349 }
 0xbff   : > { %v2137_v41 = vpop.eup %2136 }
 0xc00   : > { %v1182_v43 = vmul.f32 %v2137_v41, %v2133_v32 }
 0xc02   : > { %2017 = vmatmul.mubr.msk.f32.vlgmr.msra.gmra.mxu1 %vm419_vm3, %v1182_v43 }
 0xc03   : > { %v2139_v47 = vpop.eup %2138  ;;  %2025 = vmatpush3.msra.mxu1 %v1350_v44  ;;  %2026 = vmatprep.mubr.msk.f32.mxu1 %vm2207_vm0, %v2206_v1 }
 0xc04   : > { %2036 = vmatprep.subr.mxu1 %v2206_v1  ;;  %v1348_v48 = vmul.f32 %v2139_v47, %v2135_v34 }
 0xc06   : > { %2027 = vmatmul.mubr.msk.f32.vlgmr.msra.gmra.mxu1 %vm419_vm3, %v1348_v48 }
 0xc07   : > { %2037 = vmatpush3.msra.mxu1 %v2379_v42  ;;  %2040 = vmatprep.mubr.msk.f32.mxu1 %vm2207_vm0, %v2206_v1 }
 0xc08   : > { %2038 = vmatprep.subr.mxu1 %v2206_v1 }
 0xc09   : > { %2039 = vmatpush3.msra.mxu1 %v2386_v45 }
 0xc0a   : > { %2054 = vmatprep.subr.mxu1 %v2206_v1 }
 0xcc2   : > { %v1255_v49 = vpop.f32.mrf.mxu1 }
 0xcc3   : > { %2041 = vmatmul.mubr.msk.f32.vlgmr.msra.gmra.mxu1 %vm343_vm2, %v1255_v49 }
 0xcc4   : > { %v2018_v50 = vpop.f32.mrf.mxu1  ;;  %2055 = vmatpush3.msra.mxu1 %v2440_v13  ;;  %2070 = vmatprep.mubr.msk.f32.mxu1 %vm2207_vm0, %v2206_v1 }
 0xcc5   : > { %2056 = vmatprep.subr.mxu1 %v2206_v1 }
 0xcc6   : > { %v1421_v42 = vpop.f32.mrf.mxu1  ;;  %2057 = vmatpush3.msra.mxu1 %v2445_v14 }
 0xcc7   : > { %2034 = vmatmul.mubr.msk.f32.vlgmr.msra.gmra.mxu0 %vm343_vm2, %v1421_v42  ;;  %2058 = vmatprep.subr.mxu1 %v2206_v1 }
 0xcc8   : > { %v2028_v45 = vpop.f32.mrf.mxu1  ;;  %2044 = vmatpush3.msra.mxu0 %v2413_v8  ;;  %2051 = vmatprep.mubr.msk.f32.mxu0 %vm2207_vm0, %v2206_v1 }
 0xcc9   : > { %2045 = vmatprep.subr.mxu0 %v2206_v1  ;;  %2059 = vmatpush3.msra.mxu1 %v2453_v15 }
 0xcca   : > { %2046 = vmatpush3.msra.mxu0 %v2419_v5  ;;  %2060 = vmatprep.subr.mxu1 %v2206_v1 }
 0xccb   : > { %2047 = vmatprep.subr.mxu0 %v2206_v1  ;;  %2061 = vmatpush3.msra.mxu1 %v2460_v16 }
 0xccc   : > { %2048 = vmatpush3.msra.mxu0 %v2425_v11  ;;  %2062 = vmatprep.subr.mxu1 %v2206_v1 }
 0xccd   : > { %2049 = vmatprep.subr.mxu0 %v2206_v1  ;;  %2063 = vmatpush3.msra.mxu1 %v2467_v17 }
 0xcce   : > { %2050 = vmatpush3.msra.mxu0 %v2432_v12  ;;  %2064 = vmatprep.subr.mxu1 %v2206_v1 }
 0xccf   : > { %2065 = vmatpush3.msra.mxu1 %v2497_v0 }
 0xcd0   : > { %2066 = vmatprep.subr.mxu1 %v2206_v1 }
 0xcd1   : > { %2067 = vmatpush3.msra.mxu1 %v2504_v2 }
 0xcd2   : > { %2068 = vmatprep.subr.mxu1 %v2206_v1 }
 0xcd3   : > { %2069 = vmatpush3.msra.mxu1 %v2510_v3 }
 0xd83   : > { %v1567_v8 = vpop.f32.mrf.mxu1 }
 0xd85   : > { %v2042_v5 = vpop.f32.mrf.mxu1 }
 0xd87   : > { %v1494_v11 = vpop.f32.mrf.mxu0 }
 0xd88   : > { %v1568_v13 = vadd.f32 %v1567_v8, %v1494_v11 }
 0xd89   : > { %v2035_v14 = vpop.f32.mrf.mxu0 }
 0xd8a   : > { %v1571_v15 = vadd.f32 %v1568_v13, %v2404_v54 }
 0xd8c   : > { %v1572_v12 = vadd.f32 %v1571_v15, %v2540_v61 }
 0xd8e   : > { %v1573_v16 = vsel %vm266_vm1, %v1572_v12, 0.0 }
 0xd8f   : > { %1574 = vadd.xlane.f32.xlu1 %v1573_v16 }
 0xe18   : > { %v1575_v17 = vpop.xlane.xlu1 %1574 }
 0xe19   : > { %v1576_v0 = vmul.f32 0.03125, %v1575_v17 }
 0xe1b   : > { %v1577_v51 = vsub.f32 %v1572_v12, %v1576_v0 }
 0xe1d   : > { %v1578_v2 = vmul.f32 %v1577_v51, %v1577_v51 }
 0xe1f   : > { %v1579_v1 = vsel %vm266_vm1, %v1578_v2, 0.0 }
 0xe20   : > { %1580 = vadd.xlane.f32.xlu0 %v1579_v1 }
 0xea9   : > { %v1581_v3 = vpop.xlane.xlu0 %1580 }
 0xeaa   : > { %v1582_v52 = vmul.f32 0.03125, %v1581_v3 }
 0xeac   : > { %v1583_v53 = vadd.f32 1e-05, %v1582_v52 }
 0xeae   : > { %2140 = vrsqrt.f32 %v1583_v53 }
 0xebb   : > { %v2141_v55 = vpop.eup %2140 }
 0xebc   : > { %v1585_v57 = vmul.f32 %v2141_v55, %v1577_v51 }
 0xebe   : > { %v1586_v54 = vmul.f32 %v1585_v57, %v2476_v23 }
 0xec0   : > { %v1587_v58 = vadd.f32 %v1586_v54, %v2479_v26 }
 0xec2   : > { %2052 = vmatmul.mubr.msk.f32.vlgmr.msra.gmra.mxu0 %vm266_vm1, %v1587_v58 }
 0xf82   : > { %v1657_v60 = vpop.f32.mrf.mxu0 }
 0xf83   : > { %v1658_v61 = vadd.f32 %v1657_v60, %v2517_v29 }
 0xf84   : > { %v2053_v7 = vpop.f32.mrf.mxu0 }
 0xf85   : > { %v1661_v62 = vmax.f32 %v1658_v61, 0.0 }
 0xf87   : > { %2071 = vmatmul.mubr.msk.f32.vlgmr.msra.gmra.mxu1 %vm931_vm4, %v1661_v62 }
0x1047   : > { %v1731_v63 = vpop.f32.mrf.mxu1 }
0x1048   : > { %v1732_v9 = vadd.f32 %v1731_v63, %v2525_v35 }
0x1049   : > { %v2072_v6 = vpop.f32.mrf.mxu1 }
0x104a   : > { %v1735_v10 = vadd.f32 %v1732_v9, %v1587_v58 }
0x104c   : > { %v1736_v18 = vsel %vm266_vm1, %v1735_v10, 0.0 }
0x104d   : > { %1737 = vadd.xlane.f32.xlu0 %v1736_v18 }
0x10d6   : > { %v1738_v23 = vpop.xlane.xlu0 %1737 }
0x10d7   : > { %v1739_v26 = vmul.f32 0.03125, %v1738_v23 }
0x10d9   : > { %v1740_v19 = vsub.f32 %v1735_v10, %v1739_v26 }
0x10db   : > { %v1741_v20 = vmul.f32 %v1740_v19, %v1740_v19 }
0x10dd   : > { %v1742_v29 = vsel %vm266_vm1, %v1741_v20, 0.0 }
0x10de   : > { %1743 = vadd.xlane.f32.xlu1 %v1742_v29 }
0x1167   : > { %v1744_v21 = vpop.xlane.xlu1 %1743 }
0x1168   : > { %v1745_v22 = vmul.f32 0.03125, %v1744_v21 }
0x116a   : > { %v1746_v24 = vadd.f32 1e-05, %v1745_v22 }
0x116c   : > { %2142 = vrsqrt.f32 %v1746_v24 }
0x1179   : > { %v2143_v35 = vpop.eup %2142 }
0x117a   : > { %v1748_v25 = vmul.f32 %v2143_v35, %v1740_v19 }
0x117c   : > { %v1749_v39 = vmul.f32 %v1748_v25, %v2533_v56 }
0x117e   : > { %v1750_v27 = vadd.f32 %v1749_v39, %v2536_v59 }
0x1180   : > { %1751 = vst.msk [vmem:[%s215_s7] sm:$0xff] %vm266_vm1, %v1750_v27 }
0x1181   : > { %2157 = shalt.err (!%p2154_p3)
}
0x1182   : > { %s2158_s25 = scalar_lea.hbm %s1764_s14, 128  ;;  %s2162_s11 = scalar_lea.hbm %s2664_s5, 256 }
0x1183   : > { %p2159_p4 = scmp.ne.s32.totalorder %s1764_s14, %s2158_s25  ;;  %p2163_p9 = scmp.lt.s32.totalorder %s1764_s14, %s2664_s5 }
0x1184   : > { %p2164_p10 = scmp.lt.s32.totalorder %s2162_s11, %s2158_s25 }
0x1185   : > { %p2160_p7 = pnand %p2159_p4, %p2283_p5 }
0x1186   : > { %p2165_p11 = por %p2164_p10, %p2163_p9 }
0x1187   : > { %p2161_p8 = pneg %p2160_p7 }
0x1189   : > { %p2166_p12 = pnand %p2165_p11, %p2161_p8 }
0x118b   : > { %2169 = shalt.err (!%p2166_p12)
}
0x118c   : > { %2073 = dma.vmem_to_hbm [thread:$0]  (%p2283_p5), %s1767_s8, 128, %s1764_s14, %s1753_s15  }
0x118d PF: > { %p2079_p13 = scmp.ge.s32.totalorder %s2204_s21, 2  ;;  %s1778_s6 = sand.u32 1, %s2192_s18  }
0x118e   : > { %s1779_s7 = scalar_lea.sflag [#allocation3], %s1778_s6 }
0x118f   : > { %p2076_p0 = pnand %p2079_p13, %p2287_p6 }
0x1191   : > { %p2077_p1 = pneg %p2076_p0 }
0x1193   : > { %2187 = dma.done.wait (%p2077_p1), %s1779_s7, 128  }
0x1194   : > { %2189 = vsyncadd (%p2077_p1), %s1779_s7, 4294967168  ;;  %p15_p2 = scmp.ge.s32.totalorder %s2270_s24, 4   ;;  %s2667_s18 = smov %s2196_s19 }
0x1195   : > { %s2668_s19 = smov %s2200_s20  ;;  %s2669_s20 = smov %s2281_s27 }
0x1196   : > { %s2670_s21 = smov %s2270_s24  ;;  %17 = sbr.rel (!%p15_p2) target bundleno = 3 (0x3), region = 75 }
0x119b   :  { %1784 = vsyncpa [#allocation3], 1 }
0x119c   :  { %1786 = vsyncpa [#allocation3 + $0x1], 1 }

</bundles_post_ra>
